<compile_context>
chip_gen: v7x
topology: tpu7x:2x2x1
jax: 0.10.0
libtpu: 0.0.40
codegen_flags: <defaults>
</compile_context>

<pallas_src>
import jax
import jax.numpy as jnp
from jax.experimental import pallas as pl
from jax.experimental.pallas import tpu as pltpu


def _layer(x, w_ref, b_ref, relu):
    # Cast activations to the (pre-cast) weight dtype for the MXU, accumulate
    # in f32, keep the bias + ReLU epilogue in f32.
    y = jnp.dot(x.astype(w_ref.dtype), w_ref[...],
                preferred_element_type=jnp.float32)
    y = y + b_ref[...]
    if relu:
        y = jnp.maximum(y, 0.0)
    return y


def autoencoder2_kernel(
    x_ref,
    w1_ref, b1_ref, w2_ref, b2_ref, w3_ref, b3_ref,   # encoder
    w4_ref, b4_ref, w5_ref, b5_ref, w6_ref, b6_ref,   # decoder
    e_ref, y_ref,                                      # direct outputs
):
    x = x_ref[...]

    # encoder: Linear -> ReLU -> Linear -> ReLU -> Linear
    h = _layer(x, w1_ref, b1_ref, relu=True)
    h = _layer(h, w2_ref, b2_ref, relu=True)
    e = _layer(h, w3_ref, b3_ref, relu=False)

    # decoder: Linear -> ReLU -> Linear -> ReLU -> Linear
    d = _layer(e, w4_ref, b4_ref, relu=True)
    d = _layer(d, w5_ref, b5_ref, relu=True)
    y = _layer(d, w6_ref, b6_ref, relu=False)

    # Single full-block store per output (no partial-lane column writes, no
    # zero-pad write, no post-kernel slice pass).
    e_ref[...] = e.astype(e_ref.dtype)
    y_ref[...] = y.astype(y_ref.dtype)


def prepare_params(params, weight_dtype=jnp.bfloat16):
    """One-time conversion of (W[in,out], b[out]) pairs.

    Weights -> `weight_dtype` (bf16 MXU operands by default; pass jnp.float32
    for stricter parity with an f32 reference), biases -> (1, out) f32 tiles.
    Call once at init, NOT per forward call.
    """
    flat = []
    for w, b in params:
        flat.append(jnp.asarray(w, weight_dtype))
        flat.append(jnp.asarray(b, jnp.float32).reshape(1, -1))
    return tuple(flat)


def _round_up(v, m):
    return -(-v // m) * m


def autoencoder2_forward(x, flat_params, *, block_b=512):
    """x: [B, input_dim] float32.  flat_params: output of prepare_params().

    Returns (e, y) matching the PyTorch module's forward().
    """
    B, input_dim = x.shape
    output_dim = flat_params[4].shape[1]   # encoder's last Linear: W3[in, out]

    # Batch tile: sublane-aligned (multiple of 8), as large as block_b allows,
    # but keep >= 2 grid steps when B allows it so v7x's two TensorCores both
    # get work via dimension_semantics=("parallel",).
    tb = _round_up(max(1, min(int(block_b), B)), 8)
    if B > 8 and pl.cdiv(B, tb) < 2:
        tb = max(8, _round_up(-(-B // 2), 8))
    grid = (pl.cdiv(B, tb),)          # ragged last block handled by Pallas

    x_spec = pl.BlockSpec((tb, input_dim), lambda i: (i, 0))

    def const_spec(a):
        # Full-array block, constant index -> stays VMEM-resident across steps.
        return pl.BlockSpec(a.shape, lambda i: (0, 0))

    in_specs = [x_spec] + [const_spec(a) for a in flat_params]
    out_specs = (
        pl.BlockSpec((tb, output_dim), lambda i: (i, 0)),   # e
        pl.BlockSpec((tb, input_dim), lambda i: (i, 0)),    # y
    )
    out_shape = (
        jax.ShapeDtypeStruct((B, output_dim), x.dtype),
        jax.ShapeDtypeStruct((B, input_dim), x.dtype),
    )

    weight_shapes = [flat_params[2 * i].shape for i in range(6)]
    flops = 2 * B * sum(di * do for di, do in weight_shapes)
    bytes_accessed = (
        x.size * x.dtype.itemsize
        + B * output_dim * x.dtype.itemsize
        + B * input_dim * x.dtype.itemsize
        + sum(int(a.size) * a.dtype.itemsize for a in flat_params)
    )
    cost = pl.CostEstimate(flops=flops, transcendentals=0,
                           bytes_accessed=bytes_accessed)

    e, y = pl.pallas_call(
        autoencoder2_kernel,
        grid=grid,
        in_specs=in_specs,
        out_specs=out_specs,
        out_shape=out_shape,
        compiler_params=pltpu.CompilerParams(
            dimension_semantics=("parallel",),      # shards steps across v7x's 2 TCs
            vmem_limit_bytes=32 * 1024 * 1024,      # safe on v7x's 64 MiB VMEM
        ),
        cost_estimate=cost,
    )(x, *flat_params)

    return e, y


def init_params(key, input_dim, hidden_dim, output_dim):
    """Deterministic init. Weights stored as [in, out] (i.e. torch W.T)."""
    dims = [
        (input_dim, hidden_dim[0]),
        (hidden_dim[0], hidden_dim[1]),
        (hidden_dim[1], output_dim),
        (output_dim, hidden_dim[1]),
        (hidden_dim[1], hidden_dim[0]),
        (hidden_dim[0], input_dim),
    ]
    params = []
    for d_in, d_out in dims:
        key, kw, kb = jax.random.split(key, 3)
        bound = 1.0 / jnp.sqrt(d_in)  # matches torch.nn.Linear default init range
        w = jax.random.uniform(kw, (d_in, d_out), jnp.float32, -bound, bound)
        b = jax.random.uniform(kb, (d_out,), jnp.float32, -bound, bound)
        params.append((w, b))
    return params


def reference_forward(x, params):
    """Pure-JAX f32 reference for correctness check."""
    def lin(h, p, relu):
        y = h @ p[0] + p[1]
        return jnp.maximum(y, 0.0) if relu else y
    h = lin(x, params[0], True)
    h = lin(h, params[1], True)
    e = lin(h, params[2], False)
    d = lin(e, params[3], True)
    d = lin(d, params[4], True)
    y = lin(d, params[5], False)
    return e, y


if __name__ == "__main__":
    B = 240                      # deliberately not a multiple of typical tile sizes
    input_dim = 64
    hidden_dim = [32, 16]
    output_dim = 8

    key = jax.random.PRNGKey(0)
    kx, kp = jax.random.split(key)
    x = jax.random.normal(kx, (B, input_dim), jnp.float32)
    params = init_params(kp, input_dim, hidden_dim, output_dim)

    # One-time parameter prep (bf16 MXU operands, (1,N) f32 biases).
    flat = prepare_params(params)

    e, y = autoencoder2_forward(x, flat, block_b=512)
    jax.block_until_ready((e, y))

    e_ref, y_ref = reference_forward(x, params)
    assert e.shape == (B, output_dim) and y.shape == (B, input_dim)
    # bf16 MXU operands (f32 accumulation) -> loosened tolerance vs f32 reference.
    # For stricter parity use prepare_params(params, weight_dtype=jnp.float32).
    assert jnp.allclose(e, e_ref, atol=5e-2, rtol=5e-2)
    assert jnp.allclose(y, y_ref, atol=5e-2, rtol=5e-2)

    print("KERNEL_OK")
</pallas_src>

<mosaic_0001>
module attributes {stable_mosaic.version = 11 : i64} {
  func.func @autoencoder2_kernel(%arg0: i32, %arg1: memref<120x64xf32, #tpu.memory_space<vmem>>, %arg2: memref<64x32xbf16, #tpu.memory_space<vmem>>, %arg3: memref<1x32xf32, #tpu.memory_space<vmem>>, %arg4: memref<32x16xbf16, #tpu.memory_space<vmem>>, %arg5: memref<1x16xf32, #tpu.memory_space<vmem>>, %arg6: memref<16x8xbf16, #tpu.memory_space<vmem>>, %arg7: memref<1x8xf32, #tpu.memory_space<vmem>>, %arg8: memref<8x16xbf16, #tpu.memory_space<vmem>>, %arg9: memref<1x16xf32, #tpu.memory_space<vmem>>, %arg10: memref<16x32xbf16, #tpu.memory_space<vmem>>, %arg11: memref<1x32xf32, #tpu.memory_space<vmem>>, %arg12: memref<32x64xbf16, #tpu.memory_space<vmem>>, %arg13: memref<1x64xf32, #tpu.memory_space<vmem>>, %arg14: memref<120x8xf32, #tpu.memory_space<vmem>>, %arg15: memref<120x64xf32, #tpu.memory_space<vmem>>) attributes {dimension_semantics = [#tpu.dimension_semantics<parallel>], iteration_bounds = array<i64: 2>, scalar_prefetch = 0 : i64, scratch_operands = 0 : i64, tpu.core_type = #tpu.core_type<tc>, window_params = [{transform_indices = @transform_0, window_bounds = array<i64: 120, 64>}, {pipeline_mode = #tpu.pipeline_mode<synchronous>, transform_indices = @transform_1, window_bounds = array<i64: 64, 32>}, {pipeline_mode = #tpu.pipeline_mode<synchronous>, transform_indices = @transform_2, window_bounds = array<i64: 1, 32>}, {pipeline_mode = #tpu.pipeline_mode<synchronous>, transform_indices = @transform_3, window_bounds = array<i64: 32, 16>}, {pipeline_mode = #tpu.pipeline_mode<synchronous>, transform_indices = @transform_4, window_bounds = array<i64: 1, 16>}, {pipeline_mode = #tpu.pipeline_mode<synchronous>, transform_indices = @transform_5, window_bounds = array<i64: 16, 8>}, {pipeline_mode = #tpu.pipeline_mode<synchronous>, transform_indices = @transform_6, window_bounds = array<i64: 1, 8>}, {pipeline_mode = #tpu.pipeline_mode<synchronous>, transform_indices = @transform_7, window_bounds = array<i64: 8, 16>}, {pipeline_mode = #tpu.pipeline_mode<synchronous>, transform_indices = @transform_8, window_bounds = array<i64: 1, 16>}, {pipeline_mode = #tpu.pipeline_mode<synchronous>, transform_indices = @transform_9, window_bounds = array<i64: 16, 32>}, {pipeline_mode = #tpu.pipeline_mode<synchronous>, transform_indices = @transform_10, window_bounds = array<i64: 1, 32>}, {pipeline_mode = #tpu.pipeline_mode<synchronous>, transform_indices = @transform_11, window_bounds = array<i64: 32, 64>}, {pipeline_mode = #tpu.pipeline_mode<synchronous>, transform_indices = @transform_12, window_bounds = array<i64: 1, 64>}, {transform_indices = @transform_13, window_bounds = array<i64: 120, 8>}, {transform_indices = @transform_14, window_bounds = array<i64: 120, 64>}]} {
    %c0 = arith.constant 0 : index
    %c0_0 = arith.constant 0 : index
    %0 = vector.load %arg1[%c0, %c0_0] : memref<120x64xf32, #tpu.memory_space<vmem>>, vector<120x64xf32>
    %1 = arith.truncf %0 : vector<120x64xf32> to vector<120x64xbf16>
    %c0_1 = arith.constant 0 : index
    %c0_2 = arith.constant 0 : index
    %2 = vector.load %arg2[%c0_1, %c0_2] : memref<64x32xbf16, #tpu.memory_space<vmem>>, vector<64x32xbf16>
    %cst = arith.constant dense<0.000000e+00> : vector<120x32xf32>
    %3 = tpu.matmul %1, %2, %cst {dimension_numbers = #tpu.dot_dimension_numbers<[1], [0], [0], [1], [0, 0, 1, 1], [], []>} : vector<120x64xbf16>, vector<64x32xbf16>, vector<120x32xf32> -> vector<120x32xf32>
    %c0_3 = arith.constant 0 : index
    %c0_4 = arith.constant 0 : index
    %4 = vector.load %arg3[%c0_3, %c0_4] : memref<1x32xf32, #tpu.memory_space<vmem>>, vector<1x32xf32>
    %5 = vector.broadcast %4 : vector<1x32xf32> to vector<120x32xf32>
    %6 = arith.addf %3, %5 : vector<120x32xf32>
    %cst_5 = arith.constant 0.000000e+00 : f32
    %7 = vector.broadcast %cst_5 : f32 to vector<120x32xf32>
    %8 = arith.maximumf %6, %7 : vector<120x32xf32>
    %9 = arith.truncf %8 : vector<120x32xf32> to vector<120x32xbf16>
    %c0_6 = arith.constant 0 : index
    %c0_7 = arith.constant 0 : index
    %10 = vector.load %arg4[%c0_6, %c0_7] : memref<32x16xbf16, #tpu.memory_space<vmem>>, vector<32x16xbf16>
    %cst_8 = arith.constant dense<0.000000e+00> : vector<120x16xf32>
    %11 = tpu.matmul %9, %10, %cst_8 {dimension_numbers = #tpu.dot_dimension_numbers<[1], [0], [0], [1], [0, 0, 1, 1], [], []>} : vector<120x32xbf16>, vector<32x16xbf16>, vector<120x16xf32> -> vector<120x16xf32>
    %c0_9 = arith.constant 0 : index
    %c0_10 = arith.constant 0 : index
    %12 = vector.load %arg5[%c0_9, %c0_10] : memref<1x16xf32, #tpu.memory_space<vmem>>, vector<1x16xf32>
    %13 = vector.broadcast %12 : vector<1x16xf32> to vector<120x16xf32>
    %14 = arith.addf %11, %13 : vector<120x16xf32>
    %cst_11 = arith.constant 0.000000e+00 : f32
    %15 = vector.broadcast %cst_11 : f32 to vector<120x16xf32>
    %16 = arith.maximumf %14, %15 : vector<120x16xf32>
    %17 = arith.truncf %16 : vector<120x16xf32> to vector<120x16xbf16>
    %c0_12 = arith.constant 0 : index
    %c0_13 = arith.constant 0 : index
    %18 = vector.load %arg6[%c0_12, %c0_13] : memref<16x8xbf16, #tpu.memory_space<vmem>>, vector<16x8xbf16>
    %cst_14 = arith.constant dense<0.000000e+00> : vector<120x8xf32>
    %19 = tpu.matmul %17, %18, %cst_14 {dimension_numbers = #tpu.dot_dimension_numbers<[1], [0], [0], [1], [0, 0, 1, 1], [], []>} : vector<120x16xbf16>, vector<16x8xbf16>, vector<120x8xf32> -> vector<120x8xf32>
    %c0_15 = arith.constant 0 : index
    %c0_16 = arith.constant 0 : index
    %20 = vector.load %arg7[%c0_15, %c0_16] : memref<1x8xf32, #tpu.memory_space<vmem>>, vector<1x8xf32>
    %21 = vector.broadcast %20 : vector<1x8xf32> to vector<120x8xf32>
    %22 = arith.addf %19, %21 : vector<120x8xf32>
    %23 = arith.truncf %22 : vector<120x8xf32> to vector<120x8xbf16>
    %c0_17 = arith.constant 0 : index
    %c0_18 = arith.constant 0 : index
    %24 = vector.load %arg8[%c0_17, %c0_18] : memref<8x16xbf16, #tpu.memory_space<vmem>>, vector<8x16xbf16>
    %cst_19 = arith.constant dense<0.000000e+00> : vector<120x16xf32>
    %25 = tpu.matmul %23, %24, %cst_19 {dimension_numbers = #tpu.dot_dimension_numbers<[1], [0], [0], [1], [0, 0, 1, 1], [], []>} : vector<120x8xbf16>, vector<8x16xbf16>, vector<120x16xf32> -> vector<120x16xf32>
    %c0_20 = arith.constant 0 : index
    %c0_21 = arith.constant 0 : index
    %26 = vector.load %arg9[%c0_20, %c0_21] : memref<1x16xf32, #tpu.memory_space<vmem>>, vector<1x16xf32>
    %27 = vector.broadcast %26 : vector<1x16xf32> to vector<120x16xf32>
    %28 = arith.addf %25, %27 : vector<120x16xf32>
    %cst_22 = arith.constant 0.000000e+00 : f32
    %29 = vector.broadcast %cst_22 : f32 to vector<120x16xf32>
    %30 = arith.maximumf %28, %29 : vector<120x16xf32>
    %31 = arith.truncf %30 : vector<120x16xf32> to vector<120x16xbf16>
    %c0_23 = arith.constant 0 : index
    %c0_24 = arith.constant 0 : index
    %32 = vector.load %arg10[%c0_23, %c0_24] : memref<16x32xbf16, #tpu.memory_space<vmem>>, vector<16x32xbf16>
    %cst_25 = arith.constant dense<0.000000e+00> : vector<120x32xf32>
    %33 = tpu.matmul %31, %32, %cst_25 {dimension_numbers = #tpu.dot_dimension_numbers<[1], [0], [0], [1], [0, 0, 1, 1], [], []>} : vector<120x16xbf16>, vector<16x32xbf16>, vector<120x32xf32> -> vector<120x32xf32>
    %c0_26 = arith.constant 0 : index
    %c0_27 = arith.constant 0 : index
    %34 = vector.load %arg11[%c0_26, %c0_27] : memref<1x32xf32, #tpu.memory_space<vmem>>, vector<1x32xf32>
    %35 = vector.broadcast %34 : vector<1x32xf32> to vector<120x32xf32>
    %36 = arith.addf %33, %35 : vector<120x32xf32>
    %cst_28 = arith.constant 0.000000e+00 : f32
    %37 = vector.broadcast %cst_28 : f32 to vector<120x32xf32>
    %38 = arith.maximumf %36, %37 : vector<120x32xf32>
    %39 = arith.truncf %38 : vector<120x32xf32> to vector<120x32xbf16>
    %c0_29 = arith.constant 0 : index
    %c0_30 = arith.constant 0 : index
    %40 = vector.load %arg12[%c0_29, %c0_30] : memref<32x64xbf16, #tpu.memory_space<vmem>>, vector<32x64xbf16>
    %cst_31 = arith.constant dense<0.000000e+00> : vector<120x64xf32>
    %41 = tpu.matmul %39, %40, %cst_31 {dimension_numbers = #tpu.dot_dimension_numbers<[1], [0], [0], [1], [0, 0, 1, 1], [], []>} : vector<120x32xbf16>, vector<32x64xbf16>, vector<120x64xf32> -> vector<120x64xf32>
    %c0_32 = arith.constant 0 : index
    %c0_33 = arith.constant 0 : index
    %42 = vector.load %arg13[%c0_32, %c0_33] : memref<1x64xf32, #tpu.memory_space<vmem>>, vector<1x64xf32>
    %43 = vector.broadcast %42 : vector<1x64xf32> to vector<120x64xf32>
    %44 = arith.addf %41, %43 : vector<120x64xf32>
    %c0_34 = arith.constant 0 : index
    %c0_35 = arith.constant 0 : index
    %45 = vector.load %arg14[%c0_34, %c0_35] : memref<120x8xf32, #tpu.memory_space<vmem>>, vector<120x8xf32>
    tpu.vector_store %arg14[%c0_34, %c0_35], %22 {strides = array<i32>} : memref<120x8xf32, #tpu.memory_space<vmem>>, vector<120x8xf32>,
    %c0_36 = arith.constant 0 : index
    %c0_37 = arith.constant 0 : index
    %46 = vector.load %arg15[%c0_36, %c0_37] : memref<120x64xf32, #tpu.memory_space<vmem>>, vector<120x64xf32>
    tpu.vector_store %arg15[%c0_36, %c0_37], %44 {strides = array<i32>} : memref<120x64xf32, #tpu.memory_space<vmem>>, vector<120x64xf32>,
    return
  }
  func.func @transform_0(%arg0: i32) -> (i32, i32) {
    %c0_i32 = arith.constant 0 : i32
    %c0_i32_0 = arith.constant 0 : i32
    return %arg0, %c0_i32 : i32, i32
  }
  func.func @transform_1(%arg0: i32) -> (i32, i32) {
    %c0_i32 = arith.constant 0 : i32
    %c0_i32_0 = arith.constant 0 : i32
    %c0_i32_1 = arith.constant 0 : i32
    return %c0_i32, %c0_i32_0 : i32, i32
  }
  func.func @transform_2(%arg0: i32) -> (i32, i32) {
    %c0_i32 = arith.constant 0 : i32
    %c0_i32_0 = arith.constant 0 : i32
    %c0_i32_1 = arith.constant 0 : i32
    return %c0_i32, %c0_i32_0 : i32, i32
  }
  func.func @transform_3(%arg0: i32) -> (i32, i32) {
    %c0_i32 = arith.constant 0 : i32
    %c0_i32_0 = arith.constant 0 : i32
    %c0_i32_1 = arith.constant 0 : i32
    return %c0_i32, %c0_i32_0 : i32, i32
  }
  func.func @transform_4(%arg0: i32) -> (i32, i32) {
    %c0_i32 = arith.constant 0 : i32
    %c0_i32_0 = arith.constant 0 : i32
    %c0_i32_1 = arith.constant 0 : i32
    return %c0_i32, %c0_i32_0 : i32, i32
  }
  func.func @transform_5(%arg0: i32) -> (i32, i32) {
    %c0_i32 = arith.constant 0 : i32
    %c0_i32_0 = arith.constant 0 : i32
    %c0_i32_1 = arith.constant 0 : i32
    return %c0_i32, %c0_i32_0 : i32, i32
  }
  func.func @transform_6(%arg0: i32) -> (i32, i32) {
    %c0_i32 = arith.constant 0 : i32
    %c0_i32_0 = arith.constant 0 : i32
    %c0_i32_1 = arith.constant 0 : i32
    return %c0_i32, %c0_i32_0 : i32, i32
  }
  func.func @transform_7(%arg0: i32) -> (i32, i32) {
    %c0_i32 = arith.constant 0 : i32
    %c0_i32_0 = arith.constant 0 : i32
    %c0_i32_1 = arith.constant 0 : i32
    return %c0_i32, %c0_i32_0 : i32, i32
  }
  func.func @transform_8(%arg0: i32) -> (i32, i32) {
    %c0_i32 = arith.constant 0 : i32
    %c0_i32_0 = arith.constant 0 : i32
    %c0_i32_1 = arith.constant 0 : i32
    return %c0_i32, %c0_i32_0 : i32, i32
  }
  func.func @transform_9(%arg0: i32) -> (i32, i32) {
    %c0_i32 = arith.constant 0 : i32
    %c0_i32_0 = arith.constant 0 : i32
    %c0_i32_1 = arith.constant 0 : i32
    return %c0_i32, %c0_i32_0 : i32, i32
  }
  func.func @transform_10(%arg0: i32) -> (i32, i32) {
    %c0_i32 = arith.constant 0 : i32
    %c0_i32_0 = arith.constant 0 : i32
    %c0_i32_1 = arith.constant 0 : i32
    return %c0_i32, %c0_i32_0 : i32, i32
  }
  func.func @transform_11(%arg0: i32) -> (i32, i32) {
    %c0_i32 = arith.constant 0 : i32
    %c0_i32_0 = arith.constant 0 : i32
    %c0_i32_1 = arith.constant 0 : i32
    return %c0_i32, %c0_i32_0 : i32, i32
  }
  func.func @transform_12(%arg0: i32) -> (i32, i32) {
    %c0_i32 = arith.constant 0 : i32
    %c0_i32_0 = arith.constant 0 : i32
    %c0_i32_1 = arith.constant 0 : i32
    return %c0_i32, %c0_i32_0 : i32, i32
  }
  func.func @transform_13(%arg0: i32) -> (i32, i32) {
    %c0_i32 = arith.constant 0 : i32
    %c0_i32_0 = arith.constant 0 : i32
    return %arg0, %c0_i32 : i32, i32
  }
  func.func @transform_14(%arg0: i32) -> (i32, i32) {
    %c0_i32 = arith.constant 0 : i32
    %c0_i32_0 = arith.constant 0 : i32
    return %arg0, %c0_i32 : i32, i32
  }
}

</mosaic_0001>

<bundles_post_ra>
// kernel: tpu_custom_call.1
= control target key start
LH: loop header
LB: loop body
LE: loop exit
PB: predicated region body
PF: predicated region fallthrough
CT: control target
= control target key end

     0   :  { %s1933_s29 = smov 0   ;;  %s2138_s0 = inlined_call_operand.vmem [shape: f32[240,64], index: 0, kind: input, shape index: {}]   ;;  %s2139_s1 = inlined_call_operand.vmem [shape: bf16[64,32], index: 1, kind: input, shape index: {}]   ;;  %s2140_s2 = inlined_call_operand.vmem [shape: f32[1,32], index: 2, kind: input, shape index: {}]   ;;  %s2141_s3 = inlined_call_operand.vmem [shape: bf16[32,16], index: 3, kind: input, shape index: {}]   ;;  %s2142_s4 = inlined_call_operand.vmem [shape: f32[1,16], index: 4, kind: input, shape index: {}]   ;;  %s2143_s5 = inlined_call_operand.vmem [shape: bf16[16,8], index: 5, kind: input, shape index: {}]   ;;  %s2144_s6 = inlined_call_operand.vmem [shape: f32[1,8], index: 6, kind: input, shape index: {}]   ;;  %s2145_s7 = inlined_call_operand.vmem [shape: bf16[8,16], index: 7, kind: input, shape index: {}]   ;;  %s2146_s8 = inlined_call_operand.vmem [shape: f32[1,16], index: 8, kind: input, shape index: {}]   ;;  %s2147_s9 = inlined_call_operand.vmem [shape: bf16[16,32], index: 9, kind: input, shape index: {}]   ;;  %s2148_s10 = inlined_call_operand.vmem [shape: f32[1,32], index: 10, kind: input, shape index: {}]   ;;  %s2149_s11 = inlined_call_operand.vmem [shape: bf16[32,64], index: 11, kind: input, shape index: {}]   ;;  %s2150_s12 = inlined_call_operand.vmem [shape: f32[1,64], index: 12, kind: input, shape index: {}]   ;;  %s2151_s13 = inlined_call_operand.vmem [shape: f32[240,8], index: 13, kind: output, shape index: {0}]   ;;  %s2152_s14 = inlined_call_operand.vmem [shape: f32[240,64], index: 14, kind: output, shape index: {1}]  }
   0x1 LB: > { %s1580_s30 = sadd.s32 4294967295, %s1856_s29   ;;  %p1584_p0 = scmp.ge.s32.totalorder %s1856_s29, 1  ;;  %s1856_s29 = sphi %s1933_s29, %s25_s29  }
   0x2   : > { %p416_p1 = scmp.lt.s32.totalorder %s1856_s29, 3 }
   0x4   : > { %p417_p2 = pnand %p1584_p0, %p416_p1 }
   0x5   : > { %v1840_v0 = vld [vmem:[%s2139_s1] sm:$0xff] (!%p417_p2)   ;;  %s467_s17 = smul.u32 (!%p417_p2), 15, %s1580_s30  ;;  %v1841_v1 = vld [vmem:[%s2139_s1 + $0x8] sm:$0xff] (!%p417_p2)   ;;  %v1842_v2 = vld [vmem:[%s2139_s1 + $0x10] sm:$0xff] (!%p417_p2)   ;;  %vm548_vm0 = vcmask (!%p417_p2), 523264   ;;  %vm715_vm1 = vcmask (!%p417_p2), 261120  }
   0x6   : > { %420 = sbr.rel (%p417_p2) target bundleno = 1372 (0x55c), region = 72  ;;  %1713 = vmatprep.subr.bf16.mxu0 (!%p417_p2), %v1840_v0  ;;  %v1843_v3 = vld [vmem:[%s2139_s1 + $0x18] sm:$0xff] (!%p417_p2)   ;;  %v1844_v27 = vld [vmem:[%s2141_s3] sm:$0xff] (!%p417_p2)   ;;  %v1845_v28 = vld [vmem:[%s2141_s3 + $0x8] sm:$0xff] (!%p417_p2)   ;;  %vm1036_vm2 = vcmask (!%p417_p2), 1043456   ;;  %vm874_vm3 = vcmask (!%p417_p2), 130048  }
   0x7   : > { %p468_p3 = scmp.lt.s32.totalorder (!%p417_p2), %s467_s17, 29  ;;  %1714 = vmatpush3.bf16.msra.mxu0 (!%p417_p2), %v1840_v0  ;;  %1737 = vmatprep.subr.bf16.mxu1 (!%p417_p2), %v1844_v27  ;;  %v1846_v29 = vld [vmem:[%s2143_s5] sm:$0xff] (!%p417_p2)   ;;  %vm1011_vm4 = vcmask (!%p417_p2), 64512  }
   0x8   : > { %1715 = vmatprep.subr.bf16.mxu0 (!%p417_p2), %v1841_v1  ;;  %1738 = vmatpush3.bf16.msra.mxu1 (!%p417_p2), %v1844_v27  ;;  %v1588_v30 = vld [vmem:[%s2140_s2] ss:$0 sm:$0xff] (!%p417_p2) }
   0x9   : > { %1739 = vmatprep.subr.bf16.mxu1 (!%p417_p2), %v1845_v28 }
   0xb   : > { %1716 = vmatpush3.bf16.msra.mxu0 (!%p417_p2), %v1841_v1 }
   0xc   : > { %1717 = vmatprep.subr.bf16.mxu0 (!%p417_p2), %v1842_v2  ;;  %1740 = vmatpush3.bf16.msra.mxu1 (!%p417_p2), %v1845_v28 }
   0xd   : > { %s2154_s17 = smov (!%p468_p3, %s467_s17), 29  ;;  %1757 = vmatprep.subr.bf16.mxu1 %v1846_v29 }
   0xe   : > { %s1950_s22 = sshll.u32 %s2154_s17, 3 }
   0xf   : > { %s1956_s25 = scalar_lea.vmem %s2138_s0, %s1950_s22  ;;  %1718 = vmatpush3.bf16.msra.mxu0 %v1842_v2  ;;  %s2028_s17 = scalar_lea.vmem %s2151_s13, %s1950_s22 }
  0x10   : > { %v486_v4 = vld [vmem:[%s1956_s25] sm:$0xff]  ;;  %v487_v5 = vld [vmem:[%s1956_s25 + $0x8] sm:$0xff]  ;;  %v488_v7 = vld [vmem:[%s1956_s25 + $0x10] sm:$0xff]  ;;  %1719 = vmatprep.subr.bf16.mxu0 %v1843_v3  ;;  %s2103_s16 = scalar_lea.vmem %s2152_s14, %s1950_s22 }
  0x11   : > { %v501_v6 = vpack.c.bf16 %v487_v5, %v486_v4  ;;  %v489_v8 = vld [vmem:[%s1956_s25 + $0x18] sm:$0xff]  ;;  %v490_v9 = vld [vmem:[%s1956_s25 + $0x20] sm:$0xff]  ;;  %v491_v10 = vld [vmem:[%s1956_s25 + $0x28] sm:$0xff] }
  0x12   : > { %v502_v11 = vpack.c.bf16 %v489_v8, %v488_v7  ;;  %v503_v12 = vpack.c.bf16 %v491_v10, %v490_v9  ;;  %v492_v13 = vld [vmem:[%s1956_s25 + $0x30] sm:$0xff]  ;;  %v493_v14 = vld [vmem:[%s1956_s25 + $0x38] sm:$0xff]  ;;  %v494_v15 = vld [vmem:[%s1956_s25 + $0x40] sm:$0xff] }
  0x13   : > { %1721 = vmatprep.mubr.msk.bf16.mxu0 %vm548_vm0, %v501_v6  ;;  %1720 = vmatpush3.bf16.msra.mxu0 %v1843_v3  ;;  %v495_v16 = vld [vmem:[%s1956_s25 + $0x48] sm:$0xff]  ;;  %v504_v17 = vpack.c.bf16 %v493_v14, %v492_v13  ;;  %v496_v19 = vld [vmem:[%s1956_s25 + $0x50] sm:$0xff]  ;;  %v497_v20 = vld [vmem:[%s1956_s25 + $0x58] sm:$0xff] }
  0x14   : > { %v505_v18 = vpack.c.bf16 %v495_v16, %v494_v15  ;;  %v498_v21 = vld [vmem:[%s1956_s25 + $0x60] sm:$0xff]  ;;  %v499_v22 = vld [vmem:[%s1956_s25 + $0x68] sm:$0xff]  ;;  %v506_v23 = vpack.c.bf16 %v497_v20, %v496_v19  ;;  %v500_v25 = vld [vmem:[%s1956_s25 + $0x70] sm:$0xff] }
  0x15   : > { %v507_v24 = vpack.c.bf16 %v499_v22, %v498_v21  ;;  %v508_v26 = vpack.c.bf16 %v500_v25, %v500_v25  ;;  %v1003_v21 = vld [vmem:[%s2145_s7] sm:$0xf] }
  0x16   : > { %1722 = vmatmul.mubr.msk.bf16.vlgmr.msra.gmra.mrb[0].mxu0 %vm548_vm0, %v502_v11  ;;  %1831 = vmatprep.subr.msk.bf16.mxu0 %vm1036_vm2, %v1003_v21  ;;  %v1038_v22 = vsel %vm1036_vm2, %v1003_v21, 0 }
  0x17   : > { %1725 = vmatprep.mubr.msk.bf16.mxu0 %vm548_vm0, %v503_v12  ;;  %1776 = vmatpush3.bf16.msra.mxu0 %v1038_v22 }
  0x1e   : > { %1726 = vmatmul.mubr.msk.bf16.gmra.mrb[4].mxu0 %vm548_vm0, %v504_v17 }
  0x1f   : > { %1729 = vmatprep.mubr.msk.bf16.mxu0 %vm548_vm0, %v505_v18 }
  0x26   : > { %1730 = vmatmul.mubr.msk.bf16.gmra.mrb[8].mxu0 %vm548_vm0, %v506_v23  ;;  %v1601_v23 = vld [vmem:[%s2142_s4] ss:$0 sm:$0xff] }
  0x27   : > { %1733 = vmatprep.mubr.msk.bf16.mxu0 %vm548_vm0, %v507_v24 }
  0x2e   : > { %1734 = vmatmul.mubr.msk.bf16.gmra.mrb[12].mxu0 %vm548_vm0, %v508_v26 }
  0xe9   : > { %v1723_v31 = vpop.f32.mrb[0].mxu0 }
  0xea   : > { %v616_v32 = vadd.f32 %v1723_v31, %v1588_v30  ;;  %v607_v33 = vpop.f32.mrb[1].mxu0 }
  0xeb   : > { %v608_v34 = vadd.f32 %v1588_v30, %v607_v33  ;;  %v1724_v35 = vpop.f32.mrb[2].mxu0 }
  0xec   : > { %v619_v36 = vadd.f32 %v1724_v35, %v1588_v30  ;;  %v610_v37 = vpop.f32.mrb[3].mxu0  ;;  %v671_v39 = vmax.f32 %v616_v32, 0.0 }
  0xed   : > { %v611_v38 = vadd.f32 %v1588_v30, %v610_v37  ;;  %v669_v41 = vmax.f32 %v608_v34, 0.0 }
  0xee   : > { %v672_v40 = vmax.f32 %v619_v36, 0.0 }
  0xef   : > { %v670_v42 = vmax.f32 %v611_v38, 0.0 }
  0xf0   : > { %v685_v43 = vpack.c.bf16 %v672_v40, %v671_v39 }
  0xf1   : > { %v1727_v44 = vpop.f32.mrb[4].mxu0  ;;  %v684_v45 = vpack.c.bf16 %v670_v42, %v669_v41 }
  0xf2   : > { %v632_v46 = vadd.f32 %v1727_v44, %v1588_v30  ;;  %v623_v47 = vpop.f32.mrb[5].mxu0 }
  0xf3   : > { %v624_v48 = vadd.f32 %v1588_v30, %v623_v47  ;;  %v1728_v49 = vpop.f32.mrb[6].mxu0  ;;  %1741 = vmatprep.mubr.msk.bf16.mxu1 %vm715_vm1, %v684_v45 }
  0xf4   : > { %v635_v50 = vadd.f32 %v1728_v49, %v1588_v30  ;;  %v626_v51 = vpop.f32.mrb[7].mxu0  ;;  %1742 = vmatmul.mubr.msk.bf16.vlgmr.msra.gmra.mrb[0].mxu1 %vm715_vm1, %v685_v43  ;;  %v675_v53 = vmax.f32 %v632_v46, 0.0 }
  0xf5   : > { %v627_v52 = vadd.f32 %v1588_v30, %v626_v51  ;;  %1758 = vmatpush3.bf16.msra.mxu1 %v1846_v29  ;;  %v673_v55 = vmax.f32 %v624_v48, 0.0 }
  0xf6   : > { %v676_v54 = vmax.f32 %v635_v50, 0.0 }
  0xf7   : > { %v674_v56 = vmax.f32 %v627_v52, 0.0 }
  0xf8   : > { %v687_v57 = vpack.c.bf16 %v676_v54, %v675_v53 }
  0xf9   : > { %v686_v58 = vpack.c.bf16 %v674_v56, %v673_v55  ;;  %v1731_v59 = vpop.f32.mrb[8].mxu0 }
  0xfa   : > { %v648_v60 = vadd.f32 %v1731_v59, %v1588_v30  ;;  %v639_v61 = vpop.f32.mrb[9].mxu0 }
  0xfb   : > { %v640_v62 = vadd.f32 %v1588_v30, %v639_v61  ;;  %v1732_v63 = vpop.f32.mrb[10].mxu0  ;;  %1745 = vmatprep.mubr.msk.bf16.mxu1 %vm715_vm1, %v686_v58 }
  0xfc   : > { %v651_v0 = vadd.f32 %v1732_v63, %v1588_v30  ;;  %v642_v1 = vpop.f32.mrb[11].mxu0  ;;  %1746 = vmatmul.mubr.msk.bf16.gmra.mrb[4].mxu1 %vm715_vm1, %v687_v57  ;;  %v679_v3 = vmax.f32 %v648_v60, 0.0 }
  0xfd   : > { %v643_v2 = vadd.f32 %v1588_v30, %v642_v1  ;;  %v677_v5 = vmax.f32 %v640_v62, 0.0 }
  0xfe   : > { %v680_v4 = vmax.f32 %v651_v0, 0.0 }
  0xff   : > { %v678_v6 = vmax.f32 %v643_v2, 0.0 }
 0x100   : > { %v689_v7 = vpack.c.bf16 %v680_v4, %v679_v3 }
 0x101   : > { %v688_v8 = vpack.c.bf16 %v678_v6, %v677_v5  ;;  %v1735_v9 = vpop.f32.mrb[12].mxu0 }
 0x102   : > { %v664_v10 = vadd.f32 %v1735_v9, %v1588_v30  ;;  %v655_v11 = vpop.f32.mrb[13].mxu0 }
 0x103   : > { %v656_v12 = vadd.f32 %v1588_v30, %v655_v11  ;;  %v1736_v13 = vpop.f32.mrb[14].mxu0  ;;  %1749 = vmatprep.mubr.msk.bf16.mxu1 %vm715_vm1, %v688_v8 }
 0x104   : > { %v658_v14 = vpop.f32.mrb[15].mxu0  ;;  %1750 = vmatmul.mubr.msk.bf16.gmra.mrb[8].mxu1 %vm715_vm1, %v689_v7  ;;  %v683_v16 = vmax.f32 %v664_v10, 0.0 }
 0x105   : > { %v659_v15 = vadd.f32 %v1588_v30, %v658_v14  ;;  %v681_v17 = vmax.f32 %v656_v12, 0.0  ;;  %v1847_v14 = vld [vmem:[%s2147_s9] sm:$0xff]  }
 0x106   : > { %v691_v20 = vpack.c.bf16 %v683_v16, %v683_v16  ;;  %1793 = vmatprep.subr.bf16.mxu1 %v1847_v14 }
 0x107   : > { %v682_v18 = vmax.f32 %v659_v15, 0.0  ;;  %v1612_v15 = vld [vmem:[%s2144_s6] ss:$0 sm:$0xff] }
 0x109   : > { %v690_v19 = vpack.c.bf16 %v682_v18, %v681_v17 }
 0x10b   : > { %1753 = vmatprep.mubr.msk.bf16.mxu1 %vm715_vm1, %v690_v19 }
 0x10c   : > { %1754 = vmatmul.mubr.msk.bf16.gmra.mrb[12].mxu1 %vm715_vm1, %v691_v20 }
 0x1c7   : > { %v1743_v24 = vpop.f32.mrb[0].mxu1 }
 0x1c8   : > { %v783_v25 = vadd.f32 %v1743_v24, %v1601_v23  ;;  %v774_v26 = vpop.f32.mrb[1].mxu1 }
 0x1c9   : > { %v775_v27 = vadd.f32 %v1601_v23, %v774_v26  ;;  %v1744_v28 = vpop.f32.mrb[2].mxu1 }
 0x1ca   : > { %v786_v29 = vadd.f32 %v1744_v28, %v1601_v23  ;;  %v777_v30 = vpop.f32.mrb[3].mxu1  ;;  %v838_v32 = vmax.f32 %v783_v25, 0.0 }
 0x1cb   : > { %v778_v31 = vadd.f32 %v1601_v23, %v777_v30  ;;  %v836_v34 = vmax.f32 %v775_v27, 0.0 }
 0x1cc   : > { %v839_v33 = vmax.f32 %v786_v29, 0.0 }
 0x1cd   : > { %v837_v35 = vmax.f32 %v778_v31, 0.0 }
 0x1ce   : > { %v852_v36 = vpack.c.bf16 %v839_v33, %v838_v32 }
 0x1cf   : > { %v851_v37 = vpack.c.bf16 %v837_v35, %v836_v34  ;;  %v1747_v38 = vpop.f32.mrb[4].mxu1 }
 0x1d0   : > { %v799_v39 = vadd.f32 %v1747_v38, %v1601_v23  ;;  %v790_v40 = vpop.f32.mrb[5].mxu1 }
 0x1d1   : > { %v791_v41 = vadd.f32 %v1601_v23, %v790_v40  ;;  %v1748_v42 = vpop.f32.mrb[6].mxu1  ;;  %1759 = vmatprep.mubr.msk.bf16.mxu1 %vm874_vm3, %v851_v37 }
 0x1d2   : > { %v802_v43 = vadd.f32 %v1748_v42, %v1601_v23  ;;  %v793_v44 = vpop.f32.mrb[7].mxu1  ;;  %1760 = vmatmul.mubr.msk.bf16.vlgmr.msra.gmra.mrb[16].mxu1 %vm874_vm3, %v852_v36  ;;  %v842_v46 = vmax.f32 %v799_v39, 0.0 }
 0x1d3   : > { %v794_v45 = vadd.f32 %v1601_v23, %v793_v44  ;;  %v840_v48 = vmax.f32 %v791_v41, 0.0  ;;  %1794 = vmatpush3.bf16.msra.mxu1 %v1847_v14 }
 0x1d4   : > { %v843_v47 = vmax.f32 %v802_v43, 0.0 }
 0x1d5   : > { %v841_v49 = vmax.f32 %v794_v45, 0.0 }
 0x1d6   : > { %v854_v50 = vpack.c.bf16 %v843_v47, %v842_v46 }
 0x1d7   : > { %v853_v51 = vpack.c.bf16 %v841_v49, %v840_v48  ;;  %v1751_v52 = vpop.f32.mrb[8].mxu1 }
 0x1d8   : > { %v815_v53 = vadd.f32 %v1751_v52, %v1601_v23  ;;  %v806_v54 = vpop.f32.mrb[9].mxu1 }
 0x1d9   : > { %v807_v55 = vadd.f32 %v1601_v23, %v806_v54  ;;  %v1752_v56 = vpop.f32.mrb[10].mxu1  ;;  %1763 = vmatprep.mubr.msk.bf16.mxu1 %vm874_vm3, %v853_v51 }
 0x1da   : > { %v818_v57 = vadd.f32 %v1752_v56, %v1601_v23  ;;  %v809_v58 = vpop.f32.mrb[11].mxu1  ;;  %1764 = vmatmul.mubr.msk.bf16.gmra.mrb[20].mxu1 %vm874_vm3, %v854_v50  ;;  %v846_v60 = vmax.f32 %v815_v53, 0.0  ;;  %v1849_v56 = vld [vmem:[%s2149_s11 + $0x8] sm:$0xff]  }
 0x1db   : > { %v810_v59 = vadd.f32 %v1601_v23, %v809_v58  ;;  %v844_v62 = vmax.f32 %v807_v55, 0.0  ;;  %v1848_v55 = vld [vmem:[%s2149_s11] sm:$0xff]  }
 0x1dc   : > { %v847_v61 = vmax.f32 %v818_v57, 0.0  ;;  %1811 = vmatprep.subr.bf16.mxu0 %v1848_v55  ;;  %v1622_v57 = vld [vmem:[%s2146_s8] ss:$0 sm:$0xff] }
 0x1dd   : > { %v845_v63 = vmax.f32 %v810_v59, 0.0 }
 0x1de   : > { %v856_v0 = vpack.c.bf16 %v847_v61, %v846_v60 }
 0x1df   : > { %v855_v1 = vpack.c.bf16 %v845_v63, %v844_v62  ;;  %v1755_v2 = vpop.f32.mrb[12].mxu1 }
 0x1e0   : > { %v831_v3 = vadd.f32 %v1755_v2, %v1601_v23  ;;  %v822_v4 = vpop.f32.mrb[13].mxu1 }
 0x1e1   : > { %v823_v5 = vadd.f32 %v1601_v23, %v822_v4  ;;  %v1756_v6 = vpop.f32.mrb[14].mxu1  ;;  %1767 = vmatprep.mubr.msk.bf16.mxu1 %vm874_vm3, %v855_v1 }
 0x1e2   : > { %v825_v7 = vpop.f32.mrb[15].mxu1  ;;  %1768 = vmatmul.mubr.msk.bf16.gmra.mrb[24].mxu1 %vm874_vm3, %v856_v0  ;;  %v850_v9 = vmax.f32 %v831_v3, 0.0 }
 0x1e3   : > { %v826_v8 = vadd.f32 %v1601_v23, %v825_v7  ;;  %v848_v10 = vmax.f32 %v823_v5, 0.0 }
 0x1e4   : > { %v858_v13 = vpack.c.bf16 %v850_v9, %v850_v9 }
 0x1e5   : > { %v849_v11 = vmax.f32 %v826_v8, 0.0 }
 0x1e7   : > { %v857_v12 = vpack.c.bf16 %v849_v11, %v848_v10 }
 0x1e9   : > { %1771 = vmatprep.mubr.msk.bf16.mxu1 %vm874_vm3, %v857_v12 }
 0x1ea   : > { %1772 = vmatmul.mubr.msk.bf16.gmra.mrb[28].mxu1 %vm874_vm3, %v858_v13 }
 0x2a5   : > { %v1761_v16 = vpop.f32.mrb[16].mxu1 }
 0x2a6   : > { %v942_v17 = vadd.f32 %v1761_v16, %v1612_v15  ;;  %v933_v18 = vpop.f32.mrb[17].mxu1 }
 0x2a7   : > { %v934_v19 = vadd.f32 %v1612_v15, %v933_v18  ;;  %v1762_v20 = vpop.f32.mrb[18].mxu1 }
 0x2a8   : > { %1462 = vst.msk [vmem:[%s2028_s17 + $0x10] sm:$0xff] %vm1011_vm4, %v942_v17  ;;  %v945_v21 = vadd.f32 %v1762_v20, %v1612_v15  ;;  %v936_v22 = vpop.f32.mrb[19].mxu1 }
 0x2a9   : > { %1460 = vst.msk [vmem:[%s2028_s17] sm:$0xff] %vm1011_vm4, %v934_v19  ;;  %v937_v23 = vadd.f32 %v1612_v15, %v936_v22 }
 0x2aa   : > { %v996_v24 = vpack.c.bf16 %v945_v21, %v942_v17  ;;  %1463 = vst.msk [vmem:[%s2028_s17 + $0x18] sm:$0xff] %vm1011_vm4, %v945_v21 }
 0x2ab   : > { %v995_v25 = vpack.c.bf16 %v937_v23, %v934_v19  ;;  %1461 = vst.msk [vmem:[%s2028_s17 + $0x8] sm:$0xff] %vm1011_vm4, %v937_v23 }
 0x2ad   : > { %v1765_v26 = vpop.f32.mrb[20].mxu1  ;;  %1777 = vmatprep.mubr.msk.bf16.mxu0 %vm1011_vm4, %v995_v25 }
 0x2ae   : > { %v958_v27 = vadd.f32 %v1765_v26, %v1612_v15  ;;  %v949_v28 = vpop.f32.mrb[21].mxu1  ;;  %1778 = vmatmul.mubr.msk.bf16.vlgmr.msra.gmra.mrb[16].mxu0 %vm1011_vm4, %v996_v24 }
 0x2af   : > { %v950_v29 = vadd.f32 %v1612_v15, %v949_v28  ;;  %v1766_v30 = vpop.f32.mrb[22].mxu1  ;;  %1812 = vmatpush3.bf16.msra.mxu0 %v1848_v55 }
 0x2b0   : > { %1466 = vst.msk [vmem:[%s2028_s17 + $0x30] sm:$0xff] %vm1011_vm4, %v958_v27  ;;  %v961_v31 = vadd.f32 %v1766_v30, %v1612_v15  ;;  %v952_v32 = vpop.f32.mrb[23].mxu1  ;;  %1813 = vmatprep.subr.bf16.mxu0 %v1849_v56 }
 0x2b1   : > { %1464 = vst.msk [vmem:[%s2028_s17 + $0x20] sm:$0xff] %vm1011_vm4, %v950_v29  ;;  %v953_v33 = vadd.f32 %v1612_v15, %v952_v32 }
 0x2b2   : > { %v998_v34 = vpack.c.bf16 %v961_v31, %v958_v27  ;;  %1467 = vst.msk [vmem:[%s2028_s17 + $0x38] sm:$0xff] %vm1011_vm4, %v961_v31 }
 0x2b3   : > { %v997_v35 = vpack.c.bf16 %v953_v33, %v950_v29  ;;  %1465 = vst.msk [vmem:[%s2028_s17 + $0x28] sm:$0xff] %vm1011_vm4, %v953_v33  ;;  %1814 = vmatpush3.bf16.msra.mxu0 %v1849_v56 }
 0x2b5   : > { %v1769_v36 = vpop.f32.mrb[24].mxu1  ;;  %1781 = vmatprep.mubr.msk.bf16.mxu0 %vm1011_vm4, %v997_v35 }
 0x2b6   : > { %v974_v37 = vadd.f32 %v1769_v36, %v1612_v15  ;;  %v965_v38 = vpop.f32.mrb[25].mxu1  ;;  %1782 = vmatmul.mubr.msk.bf16.gmra.mrb[20].mxu0 %vm1011_vm4, %v998_v34 }
 0x2b7   : > { %v966_v39 = vadd.f32 %v1612_v15, %v965_v38  ;;  %v1770_v40 = vpop.f32.mrb[26].mxu1 }
 0x2b8   : > { %1470 = vst.msk [vmem:[%s2028_s17 + $0x50] sm:$0xff] %vm1011_vm4, %v974_v37  ;;  %v977_v41 = vadd.f32 %v1770_v40, %v1612_v15  ;;  %v968_v42 = vpop.f32.mrb[27].mxu1 }
 0x2b9   : > { %1468 = vst.msk [vmem:[%s2028_s17 + $0x40] sm:$0xff] %vm1011_vm4, %v966_v39  ;;  %v969_v43 = vadd.f32 %v1612_v15, %v968_v42 }
 0x2ba   : > { %v1000_v44 = vpack.c.bf16 %v977_v41, %v974_v37  ;;  %1471 = vst.msk [vmem:[%s2028_s17 + $0x58] sm:$0xff] %vm1011_vm4, %v977_v41 }
 0x2bb   : > { %v999_v45 = vpack.c.bf16 %v969_v43, %v966_v39  ;;  %1469 = vst.msk [vmem:[%s2028_s17 + $0x48] sm:$0xff] %vm1011_vm4, %v969_v43 }
 0x2bd   : > { %v1773_v46 = vpop.f32.mrb[28].mxu1  ;;  %1785 = vmatprep.mubr.msk.bf16.mxu0 %vm1011_vm4, %v999_v45 }
 0x2be   : > { %v990_v47 = vadd.f32 %v1773_v46, %v1612_v15  ;;  %v981_v48 = vpop.f32.mrb[29].mxu1  ;;  %1786 = vmatmul.mubr.msk.bf16.gmra.mrb[24].mxu0 %vm1011_vm4, %v1000_v44 }
 0x2bf   : > { %v982_v49 = vadd.f32 %v1612_v15, %v981_v48  ;;  %v1774_v50 = vpop.f32.mrb[30].mxu1  ;;  %v1631_v48 = vld [vmem:[%s2148_s10] ss:$0 sm:$0xff] }
 0x2c0   : > { %1474 = vst.msk [vmem:[%s2028_s17 + $0x70] sm:$0xff] %vm1011_vm4, %v990_v47  ;;  %v984_v51 = vpop.f32.mrb[31].mxu1  ;;  %v1002_v54 = vpack.c.bf16 %v990_v47, %v990_v47 }
 0x2c1   : > { %1472 = vst.msk [vmem:[%s2028_s17 + $0x60] sm:$0xff] %vm1011_vm4, %v982_v49  ;;  %v985_v52 = vadd.f32 %v1612_v15, %v984_v51 }
 0x2c3   : > { %v1001_v53 = vpack.c.bf16 %v985_v52, %v982_v49  ;;  %1473 = vst.msk [vmem:[%s2028_s17 + $0x68] sm:$0xff] %vm1011_vm4, %v985_v52 }
 0x2c5   : > { %1789 = vmatprep.mubr.msk.bf16.mxu0 %vm1011_vm4, %v1001_v53 }
 0x2c6   : > { %1790 = vmatmul.mubr.msk.bf16.gmra.mrb[28].mxu0 %vm1011_vm4, %v1002_v54 }
 0x381   : > { %v1779_v58 = vpop.f32.mrb[16].mxu0 }
 0x382   : > { %v1083_v59 = vadd.f32 %v1779_v58, %v1622_v57  ;;  %v1074_v60 = vpop.f32.mrb[17].mxu0 }
 0x383   : > { %v1075_v61 = vadd.f32 %v1622_v57, %v1074_v60  ;;  %v1780_v62 = vpop.f32.mrb[18].mxu0 }
 0x384   : > { %v1086_v63 = vadd.f32 %v1780_v62, %v1622_v57  ;;  %v1077_v0 = vpop.f32.mrb[19].mxu0  ;;  %v1138_v2 = vmax.f32 %v1083_v59, 0.0 }
 0x385   : > { %v1078_v1 = vadd.f32 %v1622_v57, %v1077_v0  ;;  %v1136_v4 = vmax.f32 %v1075_v61, 0.0 }
 0x386   : > { %v1139_v3 = vmax.f32 %v1086_v63, 0.0 }
 0x387   : > { %v1137_v5 = vmax.f32 %v1078_v1, 0.0 }
 0x388   : > { %v1152_v6 = vpack.c.bf16 %v1139_v3, %v1138_v2 }
 0x389   : > { %v1151_v7 = vpack.c.bf16 %v1137_v5, %v1136_v4  ;;  %v1783_v8 = vpop.f32.mrb[20].mxu0 }
 0x38a   : > { %v1099_v9 = vadd.f32 %v1783_v8, %v1622_v57  ;;  %v1090_v10 = vpop.f32.mrb[21].mxu0 }
 0x38b   : > { %v1091_v11 = vadd.f32 %v1622_v57, %v1090_v10  ;;  %v1784_v12 = vpop.f32.mrb[22].mxu0  ;;  %1795 = vmatprep.mubr.msk.bf16.mxu1 %vm874_vm3, %v1151_v7 }
 0x38c   : > { %v1102_v13 = vadd.f32 %v1784_v12, %v1622_v57  ;;  %v1093_v14 = vpop.f32.mrb[23].mxu0  ;;  %1796 = vmatmul.mubr.msk.bf16.vlgmr.msra.gmra.mrb[32].mxu1 %vm874_vm3, %v1152_v6  ;;  %v1142_v16 = vmax.f32 %v1099_v9, 0.0 }
 0x38d   : > { %v1094_v15 = vadd.f32 %v1622_v57, %v1093_v14  ;;  %v1140_v18 = vmax.f32 %v1091_v11, 0.0 }
 0x38e   : > { %v1143_v17 = vmax.f32 %v1102_v13, 0.0 }
 0x38f   : > { %v1141_v19 = vmax.f32 %v1094_v15, 0.0 }
 0x390   : > { %v1154_v20 = vpack.c.bf16 %v1143_v17, %v1142_v16 }
 0x391   : > { %v1153_v21 = vpack.c.bf16 %v1141_v19, %v1140_v18  ;;  %v1787_v22 = vpop.f32.mrb[24].mxu0 }
 0x392   : > { %v1115_v23 = vadd.f32 %v1787_v22, %v1622_v57  ;;  %v1106_v24 = vpop.f32.mrb[25].mxu0 }
 0x393   : > { %v1107_v25 = vadd.f32 %v1622_v57, %v1106_v24  ;;  %v1788_v26 = vpop.f32.mrb[26].mxu0  ;;  %1799 = vmatprep.mubr.msk.bf16.mxu1 %vm874_vm3, %v1153_v21 }
 0x394   : > { %v1118_v27 = vadd.f32 %v1788_v26, %v1622_v57  ;;  %v1109_v28 = vpop.f32.mrb[27].mxu0  ;;  %1800 = vmatmul.mubr.msk.bf16.gmra.mrb[36].mxu1 %vm874_vm3, %v1154_v20  ;;  %v1146_v30 = vmax.f32 %v1115_v23, 0.0 }
 0x395   : > { %v1110_v29 = vadd.f32 %v1622_v57, %v1109_v28  ;;  %v1144_v32 = vmax.f32 %v1107_v25, 0.0 }
 0x396   : > { %v1147_v31 = vmax.f32 %v1118_v27, 0.0 }
 0x397   : > { %v1145_v33 = vmax.f32 %v1110_v29, 0.0 }
 0x398   : > { %v1156_v34 = vpack.c.bf16 %v1147_v31, %v1146_v30 }
 0x399   : > { %v1155_v35 = vpack.c.bf16 %v1145_v33, %v1144_v32  ;;  %v1791_v36 = vpop.f32.mrb[28].mxu0 }
 0x39a   : > { %v1131_v37 = vadd.f32 %v1791_v36, %v1622_v57  ;;  %v1122_v38 = vpop.f32.mrb[29].mxu0 }
 0x39b   : > { %v1123_v39 = vadd.f32 %v1622_v57, %v1122_v38  ;;  %v1792_v40 = vpop.f32.mrb[30].mxu0  ;;  %1803 = vmatprep.mubr.msk.bf16.mxu1 %vm874_vm3, %v1155_v35 }
 0x39c   : > { %v1125_v41 = vpop.f32.mrb[31].mxu0  ;;  %1804 = vmatmul.mubr.msk.bf16.gmra.mrb[40].mxu1 %vm874_vm3, %v1156_v34  ;;  %v1150_v43 = vmax.f32 %v1131_v37, 0.0 }
 0x39d   : > { %v1126_v42 = vadd.f32 %v1622_v57, %v1125_v41  ;;  %v1148_v44 = vmax.f32 %v1123_v39, 0.0  ;;  %v1641_v39 = vld [vmem:[%s2150_s12] ss:$0 sm:$0xff] }
 0x39e   : > { %v1158_v47 = vpack.c.bf16 %v1150_v43, %v1150_v43 }
 0x39f   : > { %v1149_v45 = vmax.f32 %v1126_v42, 0.0 }
 0x3a1   : > { %v1157_v46 = vpack.c.bf16 %v1149_v45, %v1148_v44 }
 0x3a3   : > { %1807 = vmatprep.mubr.msk.bf16.mxu1 %vm874_vm3, %v1157_v46 }
 0x3a4   : > { %1808 = vmatmul.mubr.msk.bf16.gmra.mrb[44].mxu1 %vm874_vm3, %v1158_v47 }
 0x45f   : > { %v1797_v49 = vpop.f32.mrb[32].mxu1 }
 0x460   : > { %v1241_v50 = vadd.f32 %v1797_v49, %v1631_v48  ;;  %v1232_v51 = vpop.f32.mrb[33].mxu1 }
 0x461   : > { %v1233_v52 = vadd.f32 %v1631_v48, %v1232_v51  ;;  %v1798_v53 = vpop.f32.mrb[34].mxu1 }
 0x462   : > { %v1244_v54 = vadd.f32 %v1798_v53, %v1631_v48  ;;  %v1235_v55 = vpop.f32.mrb[35].mxu1  ;;  %v1296_v57 = vmax.f32 %v1241_v50, 0.0 }
 0x463   : > { %v1236_v56 = vadd.f32 %v1631_v48, %v1235_v55  ;;  %v1294_v59 = vmax.f32 %v1233_v52, 0.0 }
 0x464   : > { %v1297_v58 = vmax.f32 %v1244_v54, 0.0 }
 0x465   : > { %v1295_v60 = vmax.f32 %v1236_v56, 0.0 }
 0x466   : > { %v1310_v61 = vpack.c.bf16 %v1297_v58, %v1296_v57 }
 0x467   : > { %v1309_v62 = vpack.c.bf16 %v1295_v60, %v1294_v59  ;;  %v1801_v63 = vpop.f32.mrb[36].mxu1 }
 0x468   : > { %v1257_v0 = vadd.f32 %v1801_v63, %v1631_v48  ;;  %v1248_v1 = vpop.f32.mrb[37].mxu1 }
 0x469   : > { %v1249_v2 = vadd.f32 %v1631_v48, %v1248_v1  ;;  %v1802_v3 = vpop.f32.mrb[38].mxu1  ;;  %1815 = vmatprep.mubr.msk.bf16.mxu0 %vm715_vm1, %v1309_v62 }
 0x46a   : > { %v1260_v4 = vadd.f32 %v1802_v3, %v1631_v48  ;;  %v1251_v5 = vpop.f32.mrb[39].mxu1  ;;  %1816 = vmatmul.mubr.msk.bf16.vlgmr.msra.gmra.mrb[32].mxu0 %vm715_vm1, %v1310_v61  ;;  %v1300_v7 = vmax.f32 %v1257_v0, 0.0 }
 0x46b   : > { %v1252_v6 = vadd.f32 %v1631_v48, %v1251_v5  ;;  %v1298_v9 = vmax.f32 %v1249_v2, 0.0 }
 0x46c   : > { %v1301_v8 = vmax.f32 %v1260_v4, 0.0 }
 0x46d   : > { %v1299_v10 = vmax.f32 %v1252_v6, 0.0 }
 0x46e   : > { %v1312_v11 = vpack.c.bf16 %v1301_v8, %v1300_v7 }
 0x46f   : > { %v1311_v12 = vpack.c.bf16 %v1299_v10, %v1298_v9  ;;  %v1805_v13 = vpop.f32.mrb[40].mxu1 }
 0x470   : > { %v1273_v14 = vadd.f32 %v1805_v13, %v1631_v48  ;;  %v1264_v15 = vpop.f32.mrb[41].mxu1 }
 0x471   : > { %v1265_v16 = vadd.f32 %v1631_v48, %v1264_v15  ;;  %v1806_v17 = vpop.f32.mrb[42].mxu1  ;;  %1819 = vmatprep.mubr.msk.bf16.mxu0 %vm715_vm1, %v1311_v12 }
 0x472   : > { %v1276_v18 = vadd.f32 %v1806_v17, %v1631_v48  ;;  %v1267_v19 = vpop.f32.mrb[43].mxu1  ;;  %1820 = vmatmul.mubr.msk.bf16.gmra.mrb[36].mxu0 %vm715_vm1, %v1312_v11  ;;  %v1304_v21 = vmax.f32 %v1273_v14, 0.0 }
 0x473   : > { %v1268_v20 = vadd.f32 %v1631_v48, %v1267_v19  ;;  %v1302_v23 = vmax.f32 %v1265_v16, 0.0 }
 0x474   : > { %v1305_v22 = vmax.f32 %v1276_v18, 0.0 }
 0x475   : > { %v1303_v24 = vmax.f32 %v1268_v20, 0.0 }
 0x476   : > { %v1314_v25 = vpack.c.bf16 %v1305_v22, %v1304_v21 }
 0x477   : > { %v1313_v26 = vpack.c.bf16 %v1303_v24, %v1302_v23  ;;  %v1809_v27 = vpop.f32.mrb[44].mxu1 }
 0x478   : > { %v1289_v28 = vadd.f32 %v1809_v27, %v1631_v48  ;;  %v1280_v29 = vpop.f32.mrb[45].mxu1 }
 0x479   : > { %v1281_v30 = vadd.f32 %v1631_v48, %v1280_v29  ;;  %v1810_v31 = vpop.f32.mrb[46].mxu1  ;;  %1823 = vmatprep.mubr.msk.bf16.mxu0 %vm715_vm1, %v1313_v26 }
 0x47a   : > { %v1283_v32 = vpop.f32.mrb[47].mxu1  ;;  %1824 = vmatmul.mubr.msk.bf16.gmra.mrb[40].mxu0 %vm715_vm1, %v1314_v25  ;;  %v1308_v34 = vmax.f32 %v1289_v28, 0.0 }
 0x47b   : > { %v1284_v33 = vadd.f32 %v1631_v48, %v1283_v32  ;;  %v1306_v35 = vmax.f32 %v1281_v30, 0.0 }
 0x47c   : > { %v1316_v38 = vpack.c.bf16 %v1308_v34, %v1308_v34 }
 0x47d   : > { %v1307_v36 = vmax.f32 %v1284_v33, 0.0 }
 0x47f   : > { %v1315_v37 = vpack.c.bf16 %v1307_v36, %v1306_v35 }
 0x481   : > { %1827 = vmatprep.mubr.msk.bf16.mxu0 %vm715_vm1, %v1315_v37 }
 0x482   : > { %1828 = vmatmul.mubr.msk.bf16.gmra.mrb[44].mxu0 %vm715_vm1, %v1316_v38 }
 0x53d   : > { %v1817_v40 = vpop.f32.mrb[32].mxu0 }
 0x53e   : > { %v1407_v41 = vadd.f32 %v1817_v40, %v1641_v39  ;;  %v1398_v42 = vpop.f32.mrb[33].mxu0 }
 0x53f   : > { %v1399_v43 = vadd.f32 %v1641_v39, %v1398_v42  ;;  %v1818_v44 = vpop.f32.mrb[34].mxu0 }
 0x540   : > { %1477 = vst.msk [vmem:[%s2103_s16 + $0x10] sm:$0xff] %vm548_vm0, %v1407_v41  ;;  %v1410_v45 = vadd.f32 %v1818_v44, %v1641_v39  ;;  %v1401_v46 = vpop.f32.mrb[35].mxu0 }
 0x541   : > { %1475 = vst.msk [vmem:[%s2103_s16] sm:$0xff] %vm548_vm0, %v1399_v43  ;;  %v1402_v47 = vadd.f32 %v1641_v39, %v1401_v46 }
 0x542   : > { %1478 = vst.msk [vmem:[%s2103_s16 + $0x18] sm:$0xff] %vm548_vm0, %v1410_v45 }
 0x543   : > { %1476 = vst.msk [vmem:[%s2103_s16 + $0x8] sm:$0xff] %vm548_vm0, %v1402_v47 }
 0x545   : > { %v1821_v48 = vpop.f32.mrb[36].mxu0 }
 0x546   : > { %v1423_v49 = vadd.f32 %v1821_v48, %v1641_v39  ;;  %v1414_v50 = vpop.f32.mrb[37].mxu0 }
 0x547   : > { %v1415_v51 = vadd.f32 %v1641_v39, %v1414_v50  ;;  %v1822_v52 = vpop.f32.mrb[38].mxu0 }
 0x548   : > { %1481 = vst.msk [vmem:[%s2103_s16 + $0x30] sm:$0xff] %vm548_vm0, %v1423_v49  ;;  %v1426_v53 = vadd.f32 %v1822_v52, %v1641_v39  ;;  %v1417_v54 = vpop.f32.mrb[39].mxu0 }
 0x549   : > { %1479 = vst.msk [vmem:[%s2103_s16 + $0x20] sm:$0xff] %vm548_vm0, %v1415_v51  ;;  %v1418_v55 = vadd.f32 %v1641_v39, %v1417_v54 }
 0x54a   : > { %1482 = vst.msk [vmem:[%s2103_s16 + $0x38] sm:$0xff] %vm548_vm0, %v1426_v53 }
 0x54b   : > { %1480 = vst.msk [vmem:[%s2103_s16 + $0x28] sm:$0xff] %vm548_vm0, %v1418_v55 }
 0x54d   : > { %v1825_v56 = vpop.f32.mrb[40].mxu0 }
 0x54e   : > { %v1439_v57 = vadd.f32 %v1825_v56, %v1641_v39  ;;  %v1430_v58 = vpop.f32.mrb[41].mxu0 }
 0x54f   : > { %v1431_v59 = vadd.f32 %v1641_v39, %v1430_v58  ;;  %v1826_v60 = vpop.f32.mrb[42].mxu0 }
 0x550   : > { %1485 = vst.msk [vmem:[%s2103_s16 + $0x50] sm:$0xff] %vm548_vm0, %v1439_v57  ;;  %v1442_v61 = vadd.f32 %v1826_v60, %v1641_v39  ;;  %v1433_v62 = vpop.f32.mrb[43].mxu0 }
 0x551   : > { %1483 = vst.msk [vmem:[%s2103_s16 + $0x40] sm:$0xff] %vm548_vm0, %v1431_v59  ;;  %v1434_v63 = vadd.f32 %v1641_v39, %v1433_v62 }
 0x552   : > { %1486 = vst.msk [vmem:[%s2103_s16 + $0x58] sm:$0xff] %vm548_vm0, %v1442_v61 }
 0x553   : > { %1484 = vst.msk [vmem:[%s2103_s16 + $0x48] sm:$0xff] %vm548_vm0, %v1434_v63 }
 0x555   : > { %v1829_v0 = vpop.f32.mrb[44].mxu0 }
 0x556   : > { %v1455_v1 = vadd.f32 %v1829_v0, %v1641_v39  ;;  %v1446_v2 = vpop.f32.mrb[45].mxu0 }
 0x557   : > { %v1447_v3 = vadd.f32 %v1641_v39, %v1446_v2  ;;  %v1830_v4 = vpop.f32.mrb[46].mxu0 }
 0x558   : > { %1489 = vst.msk [vmem:[%s2103_s16 + $0x70] sm:$0xff] %vm548_vm0, %v1455_v1  ;;  %v1449_v5 = vpop.f32.mrb[47].mxu0 }
 0x559   : > { %1487 = vst.msk [vmem:[%s2103_s16 + $0x60] sm:$0xff] %vm548_vm0, %v1447_v3  ;;  %v1450_v6 = vadd.f32 %v1641_v39, %v1449_v5 }
 0x55b   : > { %1488 = vst.msk [vmem:[%s2103_s16 + $0x68] sm:$0xff] %vm548_vm0, %v1450_v6 }
 0x55c PF: > { %s25_s29 = sadd.s32 1, %s1856_s29  }
 0x55d   : > { %p22_p4 = scmp.ge.s32.totalorder %s25_s29, 4  }
 0x55f   :  { %24 = sbr.rel (!%p22_p4) target bundleno = 1 (0x1), region = 114 }

</bundles_post_ra>
